<compile_context>
chip_gen: v6e
topology: v6e:2x2x1
jax: 0.10.0
libtpu: 0.0.40
codegen_flags: <defaults>
</compile_context>

<pallas_src>
import jax
import jax.numpy as jnp
from jax.experimental import pallas as pl
from jax.experimental.pallas import tpu as pltpu


def adapter_kernel(x_ref, w1_ref, w2_ref, o_ref):
    # x_ref: (TN, C)   w1_ref: (C, H)   w2_ref: (H, C)   o_ref: (TN, C)
    x = x_ref[...]
    # Linear 1 (no bias) + ReLU, f32 accumulation on the MXU.
    h = jnp.dot(x, w1_ref[...], preferred_element_type=jnp.float32)
    h = jnp.maximum(h, 0.0)
    # Linear 2 (no bias) + ReLU.
    y = jnp.dot(h.astype(w2_ref.dtype), w2_ref[...],
                preferred_element_type=jnp.float32)
    y = jnp.maximum(y, 0.0)
    o_ref[...] = y.astype(o_ref.dtype)


def adapter_forward(x, w1_t, w2_t, *, block_rows=2048):
    """x: (N, C), w1_t: (C, H), w2_t: (H, C)  ->  (N, C)

    block_rows: row-tile size (multiple of 8).  With C=32 f32 the default
    2048-row tile uses ~1 MiB of double-buffered VMEM — far below the scoped
    limit on v5e/v6e/v7x, so no vmem_limit_bytes override is needed.  For
    CLIP-sized c_in (512/768/1024) keep 2*(in+out) tile bytes well under
    v7x's 32 MiB default-scoped VMEM before raising the tile further.
    """
    N, C = x.shape
    H = w1_t.shape[1]
    assert w1_t.shape == (C, H) and w2_t.shape == (H, C)

    # Row tile: multiple of 8 (sublane), capped by N.
    tn = min(block_rows, N)
    tn = max(8, (tn // 8) * 8)
    # Pad rows so the grid divides evenly (keeps BlockSpecs simple/aligned).
    n_pad = (-N) % tn
    if n_pad:
        x = jnp.pad(x, ((0, n_pad), (0, 0)))
    n_padded = N + n_pad
    grid = (n_padded // tn,)

    cost = pl.CostEstimate(
        flops=4 * n_padded * C * H,                # two (.., C)x(C,H)-ish matmuls
        transcendentals=0,
        bytes_accessed=(2 * n_padded * C * x.dtype.itemsize   # x in + out
                        + C * H * w1_t.dtype.itemsize
                        + H * C * w2_t.dtype.itemsize),
    )

    out = pl.pallas_call(
        adapter_kernel,
        out_shape=jax.ShapeDtypeStruct((n_padded, C), x.dtype),
        grid_spec=pltpu.PrefetchScalarGridSpec(
            num_scalar_prefetch=0,
            grid=grid,
            in_specs=[
                pl.BlockSpec((tn, C), lambda i: (i, 0)),   # row-tiled activations
                pl.BlockSpec((C, H), lambda i: (0, 0)),    # weights stay resident
                pl.BlockSpec((H, C), lambda i: (0, 0)),
            ],
            out_specs=pl.BlockSpec((tn, C), lambda i: (i, 0)),
        ),
        compiler_params=pltpu.CompilerParams(
            dimension_semantics=("parallel",)),            # megacore split on v7x
        cost_estimate=cost,
    )(x, w1_t, w2_t)

    return out[:N] if n_pad else out


def adapter_reference(x, w1_t, w2_t):
    h = jnp.maximum(x @ w1_t, 0.0)
    return jnp.maximum(h @ w2_t, 0.0)


if __name__ == "__main__":
    key = jax.random.PRNGKey(0)
    k_x, k_w1, k_w2 = jax.random.split(key, 3)

    # Small shapes consistent with the module: 256 tokens, c_in=32, reduction=4.
    N, c_in, reduction = 256, 32, 4
    hidden = c_in // reduction  # 8

    x = jax.random.normal(k_x, (N, c_in), dtype=jnp.float32)

    # PyTorch nn.Linear weights are (out_features, in_features); pre-transpose
    # to (in, out) for the kernel.
    w1 = jax.random.normal(k_w1, (hidden, c_in), dtype=jnp.float32) * 0.1
    w2 = jax.random.normal(k_w2, (c_in, hidden), dtype=jnp.float32) * 0.1
    w1_t = w1.T  # (c_in, hidden)
    w2_t = w2.T  # (hidden, c_in)

    # Small block_rows so the demo actually exercises the multi-step pipeline.
    out = adapter_forward(x, w1_t, w2_t, block_rows=64)
    out = jax.block_until_ready(out)

    ref = adapter_reference(x, w1_t, w2_t)
    assert out.shape == (N, c_in)
    assert jnp.allclose(out, ref, atol=1e-5, rtol=1e-5), "mismatch vs reference"

    print("KERNEL_OK")
</pallas_src>

<mosaic_0001>
module attributes {stable_mosaic.version = 11 : i64} {
  func.func @adapter_kernel(%arg0: i32, %arg1: memref<64x32xf32, #tpu.memory_space<vmem>>, %arg2: memref<32x8xf32, #tpu.memory_space<vmem>>, %arg3: memref<8x32xf32, #tpu.memory_space<vmem>>, %arg4: memref<64x32xf32, #tpu.memory_space<vmem>>) attributes {dimension_semantics = [#tpu.dimension_semantics<parallel>], iteration_bounds = array<i64: 4>, scalar_prefetch = 0 : i64, scratch_operands = 0 : i64, tpu.core_type = #tpu.core_type<tc>, window_params = [{transform_indices = @transform_0, window_bounds = array<i64: 64, 32>}, {pipeline_mode = #tpu.pipeline_mode<synchronous>, transform_indices = @transform_1, window_bounds = array<i64: 32, 8>}, {pipeline_mode = #tpu.pipeline_mode<synchronous>, transform_indices = @transform_2, window_bounds = array<i64: 8, 32>}, {transform_indices = @transform_3, window_bounds = array<i64: 64, 32>}]} {
    %c0 = arith.constant 0 : index
    %c0_0 = arith.constant 0 : index
    %0 = vector.load %arg1[%c0, %c0_0] : memref<64x32xf32, #tpu.memory_space<vmem>>, vector<64x32xf32>
    %c0_1 = arith.constant 0 : index
    %c0_2 = arith.constant 0 : index
    %1 = vector.load %arg2[%c0_1, %c0_2] : memref<32x8xf32, #tpu.memory_space<vmem>>, vector<32x8xf32>
    %cst = arith.constant dense<0.000000e+00> : vector<64x8xf32>
    %2 = tpu.matmul %0, %1, %cst {dimension_numbers = #tpu.dot_dimension_numbers<[1], [0], [0], [1], [0, 0, 1, 1], [], []>} : vector<64x32xf32>, vector<32x8xf32>, vector<64x8xf32> -> vector<64x8xf32>
    %cst_3 = arith.constant 0.000000e+00 : f32
    %3 = vector.broadcast %cst_3 : f32 to vector<64x8xf32>
    %4 = arith.maximumf %2, %3 : vector<64x8xf32>
    %c0_4 = arith.constant 0 : index
    %c0_5 = arith.constant 0 : index
    %5 = vector.load %arg3[%c0_4, %c0_5] : memref<8x32xf32, #tpu.memory_space<vmem>>, vector<8x32xf32>
    %cst_6 = arith.constant dense<0.000000e+00> : vector<64x32xf32>
    %6 = tpu.matmul %4, %5, %cst_6 {dimension_numbers = #tpu.dot_dimension_numbers<[1], [0], [0], [1], [0, 0, 1, 1], [], []>} : vector<64x8xf32>, vector<8x32xf32>, vector<64x32xf32> -> vector<64x32xf32>
    %cst_7 = arith.constant 0.000000e+00 : f32
    %7 = vector.broadcast %cst_7 : f32 to vector<64x32xf32>
    %8 = arith.maximumf %6, %7 : vector<64x32xf32>
    %c0_8 = arith.constant 0 : index
    %c0_9 = arith.constant 0 : index
    %9 = vector.load %arg4[%c0_8, %c0_9] : memref<64x32xf32, #tpu.memory_space<vmem>>, vector<64x32xf32>
    tpu.vector_store %arg4[%c0_8, %c0_9], %8 {strides = array<i32>} : memref<64x32xf32, #tpu.memory_space<vmem>>, vector<64x32xf32>,
    return
  }
  func.func @transform_0(%arg0: i32) -> (i32, i32) {
    %c0_i32 = arith.constant 0 : i32
    %c0_i32_0 = arith.constant 0 : i32
    return %arg0, %c0_i32 : i32, i32
  }
  func.func @transform_1(%arg0: i32) -> (i32, i32) {
    %c0_i32 = arith.constant 0 : i32
    %c0_i32_0 = arith.constant 0 : i32
    %c0_i32_1 = arith.constant 0 : i32
    return %c0_i32, %c0_i32_0 : i32, i32
  }
  func.func @transform_2(%arg0: i32) -> (i32, i32) {
    %c0_i32 = arith.constant 0 : i32
    %c0_i32_0 = arith.constant 0 : i32
    %c0_i32_1 = arith.constant 0 : i32
    return %c0_i32, %c0_i32_0 : i32, i32
  }
  func.func @transform_3(%arg0: i32) -> (i32, i32) {
    %c0_i32 = arith.constant 0 : i32
    %c0_i32_0 = arith.constant 0 : i32
    return %arg0, %c0_i32 : i32, i32
  }
}

</mosaic_0001>

<bundles_post_ra>
// kernel: tpu_custom_call.1
= control target key start
LH: loop header
LB: loop body
LE: loop exit
PB: predicated region body
PF: predicated region fallthrough
CT: control target
= control target key end

     0   :  { %s645_s12 = smov 0   ;;  %s708_s0 = inlined_call_operand.vmem [shape: f32[256,32], index: 0, kind: input, shape index: {}]   ;;  %s709_s1 = inlined_call_operand.vmem [shape: f32[32,8], index: 1, kind: input, shape index: {}]   ;;  %s710_s2 = inlined_call_operand.vmem [shape: f32[8,32], index: 2, kind: input, shape index: {}]   ;;  %s711_s3 = inlined_call_operand.vmem [shape: f32[256,32], index: 3, kind: output, shape index: {}]  }
   0x1 LB: > { %s527_s13 = sadd.s32 4294967295, %s623_s12   ;;  %p531_p0 = scmp.ge.s32.totalorder %s623_s12, 1  ;;  %s623_s12 = sphi %s645_s12, %s13_s12  }
   0x2   : > { %p138_p1 = scmp.lt.s32.totalorder %s623_s12, 5 }
   0x4   : > { %p139_p2 = pnand %p531_p0, %p138_p1 }
   0x5   : > { %s532_s18 = sshll.u32 (!%p139_p2), %s527_s13, 3 }
   0x6   : > { %142 = sbr.rel (%p139_p2) target bundleno = 428 (0x1ac), region = 32  ;;  %p163_p3 = scmp.lt.s32.totalorder (!%p139_p2), %s532_s18, 31 }
   0xb   : > { %v185_v0 = vld [vmem:[%s709_s1 + $0x18] sm:$0xff]  ;;  %v184_v1 = vld [vmem:[%s709_s1 + $0x10] sm:$0xff]  ;;  %v183_v2 = vld [vmem:[%s709_s1 + $0x8] sm:$0xff]  ;;  %s713_s18 = smov (!%p163_p3, %s532_s18), 31  ;;  %vm186_vm0 = vcmask 261120   ;;  %vm325_vm1 = vcmask 64512  }
   0xc   : > { %575 = vmatprep.subr.mxu0 %v185_v0  ;;  %v182_v3 = vld [vmem:[%s709_s1] sm:$0xff]  ;;  %s533_s23 = sshll.u32 %s713_s18, 3 }
   0xd   : > { %576 = vmatpush3.msra.mxu0 %v185_v0  ;;  %s166_s26 = scalar_lea.vmem %s708_s0, %s533_s23  ;;  %v324_v12 = vld [vmem:[%s710_s2] sm:$0xff]  ;;  %s172_s4 = scalar_lea.vmem %s711_s3, %s533_s23 }
   0xe   : > { %577 = vmatprep.subr.mxu0 %v184_v1  ;;  %v174_v4 = vld [vmem:[%s166_s26] sm:$0xff]  ;;  %v175_v5 = vld [vmem:[%s166_s26 + $0x8] sm:$0xff]  ;;  %v176_v6 = vld [vmem:[%s166_s26 + $0x10] sm:$0xff]  ;;  %595 = vmatprep.subr.mxu1 %v324_v12 }
   0xf   : > { %578 = vmatpush3.msra.mxu0 %v184_v1  ;;  %583 = vmatprep.mubr.msk.f32.mxu0 %vm186_vm0, %v174_v4  ;;  %v177_v7 = vld [vmem:[%s166_s26 + $0x18] sm:$0xff]  ;;  %v178_v8 = vld [vmem:[%s166_s26 + $0x20] sm:$0xff]  ;;  %v179_v9 = vld [vmem:[%s166_s26 + $0x28] sm:$0xff] }
  0x10   : > { %579 = vmatprep.subr.mxu0 %v183_v2  ;;  %v180_v10 = vld [vmem:[%s166_s26 + $0x30] sm:$0xff]  ;;  %v181_v11 = vld [vmem:[%s166_s26 + $0x38] sm:$0xff]  ;;  %596 = vmatpush3.msra.mxu1 %v324_v12 }
  0x11   : > { %580 = vmatpush3.msra.mxu0 %v183_v2 }
  0x12   : > { %581 = vmatprep.subr.mxu0 %v182_v3 }
  0x13   : > { %582 = vmatpush3.msra.mxu0 %v182_v3 }
  0x14   : > { %584 = vmatmul.mubr.msk.f32.vlgmr.msra.gmra.mxu0 %vm186_vm0, %v175_v5 }
  0x15   : > { %586 = vmatprep.mubr.msk.f32.mxu0 %vm186_vm0, %v176_v6 }
  0x18   : > { %587 = vmatmul.mubr.msk.f32.gmra.mxu0 %vm186_vm0, %v177_v7 }
  0x19   : > { %589 = vmatprep.mubr.msk.f32.mxu0 %vm186_vm0, %v178_v8 }
  0x1c   : > { %590 = vmatmul.mubr.msk.f32.gmra.mxu0 %vm186_vm0, %v179_v9 }
  0x1d   : > { %592 = vmatprep.mubr.msk.f32.mxu0 %vm186_vm0, %v180_v10 }
  0x20   : > { %593 = vmatmul.mubr.msk.f32.gmra.mxu0 %vm186_vm0, %v181_v11 }
  0xd4   : > { %v585_v13 = vpop.f32.mrf.mxu0 }
  0xd5   : > { %v317_v16 = vmax.f32 %v585_v13, 0.0 }
  0xd6   : > { %v277_v14 = vpop.f32.mrf.mxu0 }
  0xd7   : > { %v316_v15 = vmax.f32 %v277_v14, 0.0 }
  0xd8   : > { %v588_v17 = vpop.f32.mrf.mxu0 }
  0xd9   : > { %597 = vmatprep.mubr.msk.f32.mxu1 %vm325_vm1, %v316_v15  ;;  %v319_v20 = vmax.f32 %v588_v17, 0.0 }
  0xda   : > { %v287_v18 = vpop.f32.mrf.mxu0  ;;  %598 = vmatmul.mubr.msk.f32.vlgmr.msra.gmra.mxu1 %vm325_vm1, %v317_v16 }
  0xdb   : > { %v318_v19 = vmax.f32 %v287_v18, 0.0 }
  0xdc   : > { %v591_v21 = vpop.f32.mrf.mxu0 }
  0xdd   : > { %600 = vmatprep.mubr.msk.f32.mxu1 %vm325_vm1, %v318_v19  ;;  %v321_v24 = vmax.f32 %v591_v21, 0.0 }
  0xde   : > { %v297_v22 = vpop.f32.mrf.mxu0  ;;  %601 = vmatmul.mubr.msk.f32.gmra.mxu1 %vm325_vm1, %v319_v20 }
  0xdf   : > { %v320_v23 = vmax.f32 %v297_v22, 0.0 }
  0xe0   : > { %v594_v25 = vpop.f32.mrf.mxu0 }
  0xe1   : > { %603 = vmatprep.mubr.msk.f32.mxu1 %vm325_vm1, %v320_v23  ;;  %v323_v28 = vmax.f32 %v594_v25, 0.0 }
  0xe2   : > { %v307_v26 = vpop.f32.mrf.mxu0  ;;  %604 = vmatmul.mubr.msk.f32.gmra.mxu1 %vm325_vm1, %v321_v24 }
  0xe3   : > { %v322_v27 = vmax.f32 %v307_v26, 0.0 }
  0xe5   : > { %606 = vmatprep.mubr.msk.f32.mxu1 %vm325_vm1, %v322_v27 }
  0xe6   : > { %607 = vmatmul.mubr.msk.f32.gmra.mxu1 %vm325_vm1, %v323_v28 }
 0x19a   : > { %v599_v29 = vpop.f32.mrf.mxu1 }
 0x19b   : > { %v456_v30 = vmax.f32 %v599_v29, 0.0 }
 0x19c   : > { %v416_v31 = vpop.f32.mrf.mxu1 }
 0x19d   : > { %464 = vst.msk [vmem:[%s172_s4 + $0x8] sm:$0xff] %vm186_vm0, %v456_v30  ;;  %v455_v32 = vmax.f32 %v416_v31, 0.0 }
 0x19e   : > { %v602_v33 = vpop.f32.mrf.mxu1 }
 0x19f   : > { %463 = vst.msk [vmem:[%s172_s4] sm:$0xff] %vm186_vm0, %v455_v32  ;;  %v458_v34 = vmax.f32 %v602_v33, 0.0 }
 0x1a0   : > { %v426_v35 = vpop.f32.mrf.mxu1 }
 0x1a1   : > { %466 = vst.msk [vmem:[%s172_s4 + $0x18] sm:$0xff] %vm186_vm0, %v458_v34  ;;  %v457_v36 = vmax.f32 %v426_v35, 0.0 }
 0x1a2   : > { %v605_v37 = vpop.f32.mrf.mxu1 }
 0x1a3   : > { %465 = vst.msk [vmem:[%s172_s4 + $0x10] sm:$0xff] %vm186_vm0, %v457_v36  ;;  %v460_v38 = vmax.f32 %v605_v37, 0.0 }
 0x1a4   : > { %v436_v39 = vpop.f32.mrf.mxu1 }
 0x1a5   : > { %468 = vst.msk [vmem:[%s172_s4 + $0x28] sm:$0xff] %vm186_vm0, %v460_v38  ;;  %v459_v40 = vmax.f32 %v436_v39, 0.0 }
 0x1a6   : > { %v608_v41 = vpop.f32.mrf.mxu1 }
 0x1a7   : > { %467 = vst.msk [vmem:[%s172_s4 + $0x20] sm:$0xff] %vm186_vm0, %v459_v40  ;;  %v462_v42 = vmax.f32 %v608_v41, 0.0 }
 0x1a8   : > { %v446_v43 = vpop.f32.mrf.mxu1 }
 0x1a9   : > { %470 = vst.msk [vmem:[%s172_s4 + $0x38] sm:$0xff] %vm186_vm0, %v462_v42  ;;  %v461_v44 = vmax.f32 %v446_v43, 0.0 }
 0x1ab   : > { %469 = vst.msk [vmem:[%s172_s4 + $0x30] sm:$0xff] %vm186_vm0, %v461_v44 }
 0x1ac PF: > { %s13_s12 = sadd.s32 1, %s623_s12  }
 0x1ad   : > { %p10_p4 = scmp.ge.s32.totalorder %s13_s12, 6  }
 0x1af   :  { %12 = sbr.rel (!%p10_p4) target bundleno = 1 (0x1), region = 62 }

</bundles_post_ra>
